<compile_context>
chip_gen: v7x
topology: tpu7x:2x2x1
jax: 0.10.0
libtpu: 0.0.40
codegen_flags: <defaults>
</compile_context>

<pallas_src>
import functools

import numpy as np
import jax
import jax.numpy as jnp
from jax.experimental import pallas as pl
from jax.experimental.pallas import tpu as pltpu


# ---------------------------------------------------------------------------
# Tiling configuration (conservative: fits default scoped VMEM on v5e/v6e/v7x).
# ---------------------------------------------------------------------------
_TM = 16              # activation rows per tile (bf16 packs 16 sublanes / vreg)
_TN = 512             # output columns per tile (multiple of 256 -> full MXU tiles)
_TK_MAX = 2048        # K tile for the (rare) K-tiled fallback
_FULL_K_LIMIT = 4096  # keep the whole K dim resident (no K grid axis) up to this size
                      # (2 * 4096 * 512 * 2B = 8 MiB of double-buffered B -> safe on v5e)


def _round_up(x, m):
    return (x + m - 1) // m * m


def _padded_k(K):
    if K <= _FULL_K_LIMIT:
        return _round_up(K, 128)
    return _round_up(K, _TK_MAX)


# ---------------------------------------------------------------------------
# Projection-matrix construction ("weight" setup, plain JAX, cached).
# ---------------------------------------------------------------------------
def build_radon_matrix(W: int, theta_deg: jnp.ndarray, align_corners: bool = False) -> jnp.ndarray:
    """Dense linear operator A s.t. sinogram_flat[n] = x_flat[n] @ A.

    A[i*W + j, c*T + t] = (1/W) * sum_r  hat(iy(t,r,c) - i) * hat(ix(t,r,c) - j)

    i.e. rotate by theta[t] via bilinear grid_sample (zeros padding), multiply by the
    normalized hard mask (uniform 1/W since segments = W/2) and sum over rows.
    """
    ang = theta_deg.astype(jnp.float32) * (jnp.pi / 180.0)           # deg2rad
    cos = jnp.cos(ang)[:, None, None]                                # (T,1,1)
    sin = jnp.sin(ang)[:, None, None]

    if align_corners:
        # affine_grid base coords, align_corners=True: linspace(-1, 1, W)
        base = jnp.linspace(-1.0, 1.0, W, dtype=jnp.float32)
    else:
        # affine_grid base coords, align_corners=False: (2*idx + 1)/W - 1
        base = (2.0 * jnp.arange(W, dtype=jnp.float32) + 1.0) / W - 1.0
    x_out = base[None, None, :]                                      # output column c
    y_out = base[None, :, None]                                      # output row r

    # R = [[cos, sin, 0], [-sin, cos, 0]]
    x_s = cos * x_out + sin * y_out                                  # (T, W, W)
    y_s = -sin * x_out + cos * y_out

    # grid_sample unnormalization
    if align_corners:
        ix = (x_s + 1.0) * (W - 1) / 2.0
        iy = (y_s + 1.0) * (W - 1) / 2.0
    else:
        ix = ((x_s + 1.0) * W - 1.0) / 2.0                           # source column
        iy = ((y_s + 1.0) * W - 1.0) / 2.0                           # source row

    pix = jnp.arange(W, dtype=jnp.float32)
    # bilinear "hat" weights; zero outside [0, W-1] == zeros padding_mode
    wx = jnp.maximum(0.0, 1.0 - jnp.abs(ix[..., None] - pix))        # (T, r, c, j)
    wy = jnp.maximum(0.0, 1.0 - jnp.abs(iy[..., None] - pix))        # (T, r, c, i)

    # sum over rotated rows r; normalized hard mask contributes the 1/W factor
    A = jnp.einsum("trci,trcj->tcij", wy, wx) / float(W)             # (T, c, i, j)
    T = theta_deg.shape[0]
    A_mat = jnp.transpose(A, (2, 3, 1, 0)).reshape(W * W, W * T)     # rows (i,j), cols (c,t)
    return A_mat.astype(jnp.float32)


@functools.lru_cache(maxsize=8)
def _cached_projection(W: int, theta_tuple: tuple):
    """Build A once per (W, theta): padded to tile multiples and cast to bf16."""
    theta = jnp.asarray(theta_tuple, dtype=jnp.float32)
    A = build_radon_matrix(W, theta)                    # (W*W, W*T) f32
    K, Nout = A.shape
    Kp = _padded_k(K)
    Np = _round_up(Nout, _TN)
    A_pad = jnp.zeros((Kp, Np), jnp.bfloat16).at[:K, :Nout].set(A.astype(jnp.bfloat16))
    return jax.block_until_ready(A_pad), Nout


# ---------------------------------------------------------------------------
# Pallas matmul kernels (the hot path).
# ---------------------------------------------------------------------------
def _mm_kernel_fullk(x_ref, a_ref, o_ref):
    # Whole K dim resident in VMEM: single MXU matmul per (i, j) tile, no accumulator.
    o_ref[...] = jnp.dot(x_ref[...], a_ref[...],
                         preferred_element_type=jnp.float32).astype(o_ref.dtype)


def _mm_kernel_ktiled(x_ref, a_ref, o_ref, acc_ref):
    @pl.when(pl.program_id(2) == 0)
    def _init():
        acc_ref[...] = jnp.zeros_like(acc_ref)

    acc_ref[...] += jnp.dot(x_ref[...], a_ref[...],
                            preferred_element_type=jnp.float32)

    @pl.when(pl.program_id(2) == pl.num_programs(2) - 1)
    def _store():
        o_ref[...] = acc_ref[...].astype(o_ref.dtype)


def _pallas_matmul(x_pad, a_pad, *, tm, tn, tk):
    Mp, Kp = x_pad.shape
    Kp2, Np = a_pad.shape
    assert Kp == Kp2 and Mp % tm == 0 and Np % tn == 0

    cost = pl.CostEstimate(
        flops=2 * Mp * Kp * Np,
        transcendentals=0,
        bytes_accessed=Mp * Kp * 2 + Kp * Np * 2 + Mp * Np * 4,
    )

    if tk == Kp:
        # No K grid axis, no accumulator scratch, no init/store branches.
        return pl.pallas_call(
            _mm_kernel_fullk,
            out_shape=jax.ShapeDtypeStruct((Mp, Np), jnp.float32),
            grid_spec=pltpu.PrefetchScalarGridSpec(
                num_scalar_prefetch=0,
                grid=(Mp // tm, Np // tn),
                in_specs=[
                    pl.BlockSpec((tm, Kp), lambda i, j: (i, 0)),
                    pl.BlockSpec((Kp, tn), lambda i, j: (0, j)),
                ],
                out_specs=pl.BlockSpec((tm, tn), lambda i, j: (i, j)),
            ),
            compiler_params=pltpu.CompilerParams(
                dimension_semantics=("parallel", "parallel")),
            cost_estimate=cost,
        )(x_pad, a_pad)

    # Fallback for very large W: tiled reduction over K (reduction axis last).
    assert Kp % tk == 0
    return pl.pallas_call(
        _mm_kernel_ktiled,
        out_shape=jax.ShapeDtypeStruct((Mp, Np), jnp.float32),
        grid_spec=pltpu.PrefetchScalarGridSpec(
            num_scalar_prefetch=0,
            grid=(Mp // tm, Np // tn, Kp // tk),
            in_specs=[
                pl.BlockSpec((tm, tk), lambda i, j, k: (i, k)),
                pl.BlockSpec((tk, tn), lambda i, j, k: (k, j)),
            ],
            out_specs=pl.BlockSpec((tm, tn), lambda i, j, k: (i, j)),
            scratch_shapes=[pltpu.VMEM((tm, tn), jnp.float32)],
        ),
        compiler_params=pltpu.CompilerParams(
            dimension_semantics=("parallel", "parallel", "arbitrary")),
        cost_estimate=cost,
    )(x_pad, a_pad)


# ---------------------------------------------------------------------------
# Fused apply: flatten/cast/pad x -> Pallas matmul -> unpad/reshape, one jit.
# ---------------------------------------------------------------------------
@functools.partial(jax.jit, static_argnames=("n", "w", "t", "tm", "tn", "tk"))
def _radon_apply(x, a_pad, *, n, w, t, tm, tn, tk):
    K = w * w
    Nout = w * t
    Kp, Np = a_pad.shape
    Mp = _round_up(max(n, 1), tm)

    x_flat = x.reshape(n, K).astype(jnp.bfloat16)
    x_pad = jnp.zeros((Mp, Kp), jnp.bfloat16).at[:n, :K].set(x_flat)

    out_pad = _pallas_matmul(x_pad, a_pad, tm=tm, tn=tn, tk=tk)       # (Mp, Np) f32
    out = out_pad[:n, :Nout].reshape(n, w, t)[:, None, :, :]          # (N, 1, W, T)
    return out


# ---------------------------------------------------------------------------
# Radon forward (matches the PyTorch module's forward for circle=True).
# ---------------------------------------------------------------------------
def radon_forward(x, theta_deg=None, circle=True):
    assert circle, "circle=False path not implemented"  # TODO(synk): sqrt(2)*W padding path
    N, C, W, H = x.shape
    assert C == 1 and W == H

    if theta_deg is None:
        theta_np = np.arange(180, dtype=np.float32)
    else:
        theta_np = np.asarray(jax.device_get(theta_deg), dtype=np.float32)
    T = int(theta_np.shape[0])

    # Cached, pre-padded, bf16 projection matrix ("weights").
    A_pad, _ = _cached_projection(W, tuple(theta_np.tolist()))
    Kp = A_pad.shape[0]
    tk = Kp if Kp <= _FULL_K_LIMIT else _TK_MAX

    return _radon_apply(x, A_pad, n=N, w=W, t=T, tm=_TM, tn=_TN, tk=tk)


if __name__ == "__main__":
    key = jax.random.PRNGKey(0)
    N, C, W = 2, 1, 16        # module asserts C == 1, W == H
    T = 180
    x = jax.random.normal(key, (N, C, W, W), dtype=jnp.float32)
    theta = jnp.arange(T, dtype=jnp.float32)

    out = jax.block_until_ready(radon_forward(x, theta))
    assert out.shape == (N, 1, W, T), out.shape
    assert bool(jnp.all(jnp.isfinite(out)))

    # Reference 1: same bf16 operands, plain-JAX contraction (validates the Pallas matmul).
    A_pad, Nout = _cached_projection(W, tuple(np.arange(T, dtype=np.float32).tolist()))
    x_bf = x.reshape(N, W * W).astype(jnp.bfloat16)
    ref_bf = jnp.dot(x_bf, A_pad[:W * W, :Nout],
                     preferred_element_type=jnp.float32).reshape(N, 1, W, T)
    err_bf = float(jnp.max(jnp.abs(out - ref_bf)))
    assert err_bf < 5e-3, f"pallas-vs-jax (bf16 operands) max abs err {err_bf}"

    # Reference 2: full f32 math (bf16 quantization of A/x stays small).
    A_f32 = build_radon_matrix(W, theta)
    ref_f32 = (x.reshape(N, W * W) @ A_f32).reshape(N, 1, W, T)
    err_f32 = float(jnp.max(jnp.abs(out - ref_f32)))
    assert err_f32 < 5e-2, f"bf16 quantization max abs err {err_f32}"

    print("KERNEL_OK")
</pallas_src>

<mosaic_0001>
module attributes {stable_mosaic.version = 11 : i64} {
  func.func @_mm_kernel_fullk(%arg0: i32, %arg1: i32, %arg2: memref<16x256xbf16, #tpu.memory_space<vmem>>, %arg3: memref<256x512xbf16, #tpu.memory_space<vmem>>, %arg4: memref<16x512xf32, #tpu.memory_space<vmem>>) attributes {dimension_semantics = [#tpu.dimension_semantics<parallel>, #tpu.dimension_semantics<parallel>], iteration_bounds = array<i64: 1, 6>, scalar_prefetch = 0 : i64, scratch_operands = 0 : i64, tpu.core_type = #tpu.core_type<tc>, window_params = [{transform_indices = @transform_0, window_bounds = array<i64: 16, 256>}, {transform_indices = @transform_1, window_bounds = array<i64: 256, 512>}, {transform_indices = @transform_2, window_bounds = array<i64: 16, 512>}]} {
    %c0 = arith.constant 0 : index
    %c0_0 = arith.constant 0 : index
    %0 = vector.load %arg2[%c0, %c0_0] : memref<16x256xbf16, #tpu.memory_space<vmem>>, vector<16x256xbf16>
    %c0_1 = arith.constant 0 : index
    %c0_2 = arith.constant 0 : index
    %1 = vector.load %arg3[%c0_1, %c0_2] : memref<256x512xbf16, #tpu.memory_space<vmem>>, vector<256x512xbf16>
    %cst = arith.constant dense<0.000000e+00> : vector<16x512xf32>
    %2 = tpu.matmul %0, %1, %cst {dimension_numbers = #tpu.dot_dimension_numbers<[1], [0], [0], [1], [0, 0, 1, 1], [], []>} : vector<16x256xbf16>, vector<256x512xbf16>, vector<16x512xf32> -> vector<16x512xf32>
    %c0_3 = arith.constant 0 : index
    %c0_4 = arith.constant 0 : index
    %3 = vector.load %arg4[%c0_3, %c0_4] : memref<16x512xf32, #tpu.memory_space<vmem>>, vector<16x512xf32>
    tpu.vector_store %arg4[%c0_3, %c0_4], %2 {strides = array<i32>} : memref<16x512xf32, #tpu.memory_space<vmem>>, vector<16x512xf32>,
    return
  }
  func.func @transform_0(%arg0: i32, %arg1: i32) -> (i32, i32) {
    %c0_i32 = arith.constant 0 : i32
    %c0_i32_0 = arith.constant 0 : i32
    return %arg0, %c0_i32 : i32, i32
  }
  func.func @transform_1(%arg0: i32, %arg1: i32) -> (i32, i32) {
    %c0_i32 = arith.constant 0 : i32
    %c0_i32_0 = arith.constant 0 : i32
    return %c0_i32, %arg1 : i32, i32
  }
  func.func @transform_2(%arg0: i32, %arg1: i32) -> (i32, i32) {
    %c0_i32 = arith.constant 0 : i32
    return %arg0, %arg1 : i32, i32
  }
}

</mosaic_0001>

<bundles_post_ra>
// kernel: _radon_apply.1
= control target key start
LH: loop header
LB: loop body
LE: loop exit
PB: predicated region body
PF: predicated region fallthrough
CT: control target
= control target key end

     0   :  { %7 = vsyncpa [#allocation3], 0  ;;  %s1390_s0 = inlined_call_operand.vmem [shape: bf16[16,256], index: 0, kind: input, shape index: {}]   ;;  %s1391_s1 = inlined_call_operand.hbm [shape: bf16[256,3072], index: 1, kind: input, shape index: {}]   ;;  %s1392_s2 = inlined_call_operand.vmem [shape: f32[16,3072], index: 2, kind: output, shape index: {}]  }
   0x1   :  { %9 = vsyncpa [#allocation3 + $0x1], 0  ;;  %s1164_s9 = smov 0   ;;  %s1166_s10 = smov 0  }
   0x2   :  { %s1168_s11 = smov 0   ;;  %s1170_s12 = smov 0  }
   0x3   :  { %s1172_s13 = smov 0   ;;  %s1174_s14 = smov 0  }
   0x4 LB: > { %s822_s15 = sadd.s32 4294967295, %s1143_s14   ;;  %s24_s16 = sadd.s32 1, %s1139_s13  ;;  %s1143_s14 = sphi %s1174_s14, %s15_s14   ;;  %s1139_s13 = sphi %s1172_s13, %s1403_s13   ;;  %s1135_s12 = sphi %s1170_s12, %s1402_s12   ;;  %s1131_s11 = sphi %s1168_s11, %s1401_s11   ;;  %s1127_s10 = sphi %s1166_s10, %s1400_s10   ;;  %s1123_s9 = sphi %s1164_s9, %s1399_s9  }
   0x5   : > { %p25_p0 = scmp.ge.s32.totalorder %s24_s16, 6  ;;  %s60_s17 = sadd.s32 1, %s1131_s11 }
   0x6   : > { %p67_p1 = scmp.ne.s32.totalorder %s1131_s11, %s1127_s10  ;;  %p68_p2 = scmp.eq.s32.totalorder %s1143_s14, 0 }
   0x7   : > { %s1405_s16 = smov (%p25_p0, %s24_s16), 0  ;;  %p73_p4 = scmp.ne.s32.totalorder %s1127_s10, %s1123_s9 }
   0x8   : > { %p1200_p3 = por %p68_p2, %p67_p1  ;;  %s57_s19 = ssub.s32 %s1139_s13, %s1405_s16 }
   0x9   : > { %p74_p5 = scmp.eq.s32.totalorder %s822_s15, 0  ;;  %p58_p6 = scmp.eq.s32.totalorder %s57_s19, 0 }
   0xa   : > { %p99_p7 = scmp.eq.s32.totalorder %s822_s15, 5  ;;  %p912_p10 = scmp.lt.s32.totalorder %s1143_s14, 6 }
   0xb   : > { %p1207_p8 = por %p74_p5, %p73_p4  ;;  %s135_s23 = sand.u32 1, %s1131_s11  }
   0xc   : > { %s1212_s21 = scalar_select %p58_p6, %s1131_s11, %s60_s17  }
   0xd   : > { %p1214_p9 = por %p99_p7, %p67_p1  ;;  %s904_s24 = sshll.u32 %s1139_s13, 8 }
   0xe   : > { %s827_s25 = sshll.u32 %s135_s23, 9  ;;  %s1224_s28 = scalar_lea.hbm %s1391_s1, %s904_s24 }
   0xf   : > { %s1395_s22 = scalar_select %p1214_p9, 1, 0 }
  0x10   : > { %s139_s29 = scalar_lea.vmem [#allocation2], %s827_s25  ;;  %p1228_p11 = pnand %p912_p10, %p1200_p3 }
  0x11   : > { %s146_s30 = sshll.u32 %s139_s29, 4  ;;  %s1235_s4 = scalar_lea.sflag [#allocation3], %s135_s23  ;;  %s1232_s30 = int_to_ptr.vmem [resolvable:$true] %s146_s30 }
  0x12   : > { %s1063_s5 = scalar_lea.hbm %s1224_s28, 8192  ;;  %p1065_p0 = pneg %p1228_p11 }
  0x13   : > { %p1064_p13 = scmp.ne.s32.totalorder %s1224_s28, %s1063_s5  ;;  %s1068_s8 = scalar_lea.hbm %s1391_s1, 49152 }
  0x14   : > { %p1069_p3 = scmp.lt.u32.totalorder %s1224_s28, %s1391_s1  ;;  %p1070_p4 = scmp.lt.u32.totalorder %s1068_s8, %s1063_s5 }
  0x15   : > { %p1066_p1 = pnand %p1065_p0, %p1064_p13  ;;  %p1072_p6 = scmp.lt.u32.totalorder %s1063_s5, %s1224_s28 }
  0x16   : > { %p1071_p5 = por %p1070_p4, %p1069_p3 }
  0x17   : > { %p1067_p2 = pneg %p1066_p1 }
  0x18   : > { %p1073_p7 = por %p1072_p6, %p1071_p5 }
  0x1a   : > { %p1074_p10 = pnand %p1073_p7, %p1067_p2 }
  0x1c   : > { %1077 = shalt.err (!%p1074_p10)
}
  0x1d   : > { %s1078_s17 = scalar_lea.vmem %s1232_s30, 8192  ;;  %s1145_s18 = smov [#allocation2]  }
  0x1e   : > { %p1079_p13 = scmp.ne.s32.totalorder %s1232_s30, %s1078_s17  ;;  %s1083_s19 = sshll.u32 %s1145_s18, 4  ;;  %s1084_s19 = int_to_ptr.vmem [resolvable:$false] %s1083_s19 }
  0x1f   : > { %s1085_s23 = scalar_lea.vmem %s1084_s19, 16384  ;;  %p1086_p9 = scmp.lt.s32.totalorder %s1232_s30, %s1084_s19 }
  0x20   : > { %p1081_p1 = pnand %p1079_p13, %p1065_p0  ;;  %p1087_p3 = scmp.lt.s32.totalorder %s1085_s23, %s1078_s17 }
  0x22   : > { %p1082_p12 = pneg %p1081_p1  ;;  %p1088_p4 = por %p1087_p3, %p1086_p9 }
  0x24   : > { %p1089_p5 = pnand %p1088_p4, %p1082_p12 }
  0x26   : > { %1092 = shalt.err (!%p1089_p5)
}
  0x27   : > { %s1146_s24 = smov 1536   ;;  %s1147_s25 = smov 256  }
  0x28   : > { %s1148_s26 = smov 16   ;;  %p154_p0 = scmp.lt.s32.totalorder %s1143_s14, 7 }
  0x29   : > { %911 = dma.hbm_to_vmem [thread:$0]  (!%p1228_p11), %s1224_s28, 8192, %s1232_s30, %s1235_s4, %s1146_s24, %s1147_s25, %s1148_s26  }
  0x2a   : > { %p1397_p2 = scmp.ge.s32.totalorder %s1143_s14, 1 }
  0x2c   : > { %p155_p6 = pnand %p1397_p2, %p154_p0 }
  0x2d   : > { %s1267_s27 = sand.u32 (!%p155_p6), 1, %s1127_s10  }
  0x2e   : > { %158 = sbr.rel (%p155_p6) target bundleno = 343 (0x157), region = 28  ;;  %s831_s29 = sshll.u32 (!%p155_p6), %s1267_s27, 9 }
  0x2f   : > { %s161_s5 = scalar_lea.sflag (!%p155_p6), [#allocation3], %s1267_s27  ;;  %s1271_s6 = scalar_lea.vmem (!%p155_p6), [#allocation2], %s831_s29 }
  0x35   : > { %1118 = dma.done.wait (%p1207_p8), %s161_s5, 8192  }
  0x36   : > { %1120 = vsyncadd (%p1207_p8), %s161_s5, 4294959104  ;;  %v964_v0 = vld [vmem:[%s1271_s6 + $0x4] ss:$16 sps:$4 sm:$0xff]   ;;  %v966_v1 = vld [vmem:[%s1271_s6 + $0xc] ss:$16 sps:$4 sm:$0xff]   ;;  %s832_s4 = sshll.u32 %s1267_s27, 6 }
  0x37   : > { %596 = vmatprep.subr.bf16.mxu0 %v964_v0  ;;  %v968_v2 = vld [vmem:[%s1271_s6] ss:$16 sps:$4 sm:$0xff]   ;;  %v969_v3 = vld [vmem:[%s1271_s6 + $0x8] ss:$16 sps:$4 sm:$0xff]   ;;  %639 = vmatprep.subr.bf16.mxu1 %v966_v1  ;;  %v970_v4 = vld [vmem:[%s1271_s6 + $0x24] ss:$16 sps:$4 sm:$0xff]  }
  0x38   : > { %597 = vmatpush1.bf16.msra.mxu0 %v968_v2  ;;  %640 = vmatpush1.bf16.msra.mxu1 %v969_v3  ;;  %v972_v5 = vld [vmem:[%s1271_s6 + $0x2c] ss:$16 sps:$4 sm:$0xff]   ;;  %v974_v6 = vld [vmem:[%s1271_s6 + $0x20] ss:$16 sps:$4 sm:$0xff]   ;;  %v975_v7 = vld [vmem:[%s1271_s6 + $0x28] ss:$16 sps:$4 sm:$0xff]  }
  0x39   : > { %598 = vmatprep.subr.bf16.mxu0 %v970_v4  ;;  %641 = vmatprep.subr.bf16.mxu1 %v972_v5  ;;  %v976_v8 = vld [vmem:[%s1271_s6 + $0x44] ss:$16 sps:$4 sm:$0xff]   ;;  %v978_v9 = vld [vmem:[%s1271_s6 + $0x4c] ss:$16 sps:$4 sm:$0xff]   ;;  %v980_v10 = vld [vmem:[%s1271_s6 + $0x40] ss:$16 sps:$4 sm:$0xff]  }
  0x3a   : > { %v981_v11 = vld [vmem:[%s1271_s6 + $0x48] ss:$16 sps:$4 sm:$0xff]   ;;  %v982_v12 = vld [vmem:[%s1271_s6 + $0x64] ss:$16 sps:$4 sm:$0xff]   ;;  %v984_v13 = vld [vmem:[%s1271_s6 + $0x6c] ss:$16 sps:$4 sm:$0xff]  }
  0x3b   : > { %v986_v14 = vld [vmem:[%s1271_s6 + $0x60] ss:$16 sps:$4 sm:$0xff]   ;;  %v987_v15 = vld [vmem:[%s1271_s6 + $0x68] ss:$16 sps:$4 sm:$0xff]   ;;  %v988_v16 = vld [vmem:[%s1271_s6 + $0x84] ss:$16 sps:$4 sm:$0xff]  }
  0x3c   : > { %599 = vmatpush1.bf16.msra.mxu0 %v974_v6  ;;  %642 = vmatpush1.bf16.msra.mxu1 %v975_v7  ;;  %v990_v17 = vld [vmem:[%s1271_s6 + $0x8c] ss:$16 sps:$4 sm:$0xff]   ;;  %v992_v18 = vld [vmem:[%s1271_s6 + $0x80] ss:$16 sps:$4 sm:$0xff]   ;;  %v993_v19 = vld [vmem:[%s1271_s6 + $0x88] ss:$16 sps:$4 sm:$0xff]  }
  0x3d   : > { %600 = vmatprep.subr.bf16.mxu0 %v976_v8  ;;  %643 = vmatprep.subr.bf16.mxu1 %v978_v9  ;;  %v994_v20 = vld [vmem:[%s1271_s6 + $0xa4] ss:$16 sps:$4 sm:$0xff]   ;;  %v996_v21 = vld [vmem:[%s1271_s6 + $0xac] ss:$16 sps:$4 sm:$0xff]   ;;  %v998_v22 = vld [vmem:[%s1271_s6 + $0xa0] ss:$16 sps:$4 sm:$0xff]  }
  0x3e   : > { %v999_v23 = vld [vmem:[%s1271_s6 + $0xa8] ss:$16 sps:$4 sm:$0xff]   ;;  %v1000_v24 = vld [vmem:[%s1271_s6 + $0xc4] ss:$16 sps:$4 sm:$0xff]   ;;  %v1002_v25 = vld [vmem:[%s1271_s6 + $0xcc] ss:$16 sps:$4 sm:$0xff]  }
  0x3f   : > { %v1004_v26 = vld [vmem:[%s1271_s6 + $0xc0] ss:$16 sps:$4 sm:$0xff]   ;;  %v1005_v27 = vld [vmem:[%s1271_s6 + $0xc8] ss:$16 sps:$4 sm:$0xff]   ;;  %v1006_v28 = vld [vmem:[%s1271_s6 + $0xe4] ss:$16 sps:$4 sm:$0xff]  }
  0x40   : > { %601 = vmatpush1.bf16.msra.mxu0 %v980_v10  ;;  %644 = vmatpush1.bf16.msra.mxu1 %v981_v11  ;;  %v1008_v29 = vld [vmem:[%s1271_s6 + $0xec] ss:$16 sps:$4 sm:$0xff]   ;;  %v1010_v30 = vld [vmem:[%s1271_s6 + $0xe0] ss:$16 sps:$4 sm:$0xff]   ;;  %v1011_v31 = vld [vmem:[%s1271_s6 + $0xe8] ss:$16 sps:$4 sm:$0xff]  }
  0x41   : > { %602 = vmatprep.subr.bf16.mxu0 %v982_v12  ;;  %645 = vmatprep.subr.bf16.mxu1 %v984_v13  ;;  %v1012_v32 = vld [vmem:[%s1271_s6 + $0x104] ss:$16 sps:$4 sm:$0xff]   ;;  %v1014_v33 = vld [vmem:[%s1271_s6 + $0x10c] ss:$16 sps:$4 sm:$0xff]   ;;  %v1016_v34 = vld [vmem:[%s1271_s6 + $0x100] ss:$16 sps:$4 sm:$0xff]  }
  0x42   : > { %v1017_v35 = vld [vmem:[%s1271_s6 + $0x108] ss:$16 sps:$4 sm:$0xff]   ;;  %v1018_v36 = vld [vmem:[%s1271_s6 + $0x124] ss:$16 sps:$4 sm:$0xff]   ;;  %v1020_v37 = vld [vmem:[%s1271_s6 + $0x12c] ss:$16 sps:$4 sm:$0xff]  }
  0x43   : > { %v1022_v38 = vld [vmem:[%s1271_s6 + $0x120] ss:$16 sps:$4 sm:$0xff]   ;;  %v1023_v39 = vld [vmem:[%s1271_s6 + $0x128] ss:$16 sps:$4 sm:$0xff]   ;;  %v1024_v40 = vld [vmem:[%s1271_s6 + $0x144] ss:$16 sps:$4 sm:$0xff]  }
  0x44   : > { %603 = vmatpush1.bf16.msra.mxu0 %v986_v14  ;;  %646 = vmatpush1.bf16.msra.mxu1 %v987_v15  ;;  %v1026_v41 = vld [vmem:[%s1271_s6 + $0x14c] ss:$16 sps:$4 sm:$0xff]   ;;  %v1028_v42 = vld [vmem:[%s1271_s6 + $0x140] ss:$16 sps:$4 sm:$0xff]   ;;  %v1029_v43 = vld [vmem:[%s1271_s6 + $0x148] ss:$16 sps:$4 sm:$0xff]  }
  0x45   : > { %604 = vmatprep.subr.bf16.mxu0 %v988_v16  ;;  %647 = vmatprep.subr.bf16.mxu1 %v990_v17  ;;  %v1030_v44 = vld [vmem:[%s1271_s6 + $0x164] ss:$16 sps:$4 sm:$0xff]   ;;  %v1032_v45 = vld [vmem:[%s1271_s6 + $0x16c] ss:$16 sps:$4 sm:$0xff]   ;;  %v1034_v47 = vld [vmem:[%s1271_s6 + $0x160] ss:$16 sps:$4 sm:$0xff]  }
  0x46   : > { %v1062_v46 = vld [vmem:[%s1390_s0 + $0x4] ss:$8 sps:$4 sm:$0xff]   ;;  %v1035_v48 = vld [vmem:[%s1271_s6 + $0x168] ss:$16 sps:$4 sm:$0xff]   ;;  %v1040_v51 = vld [vmem:[%s1271_s6 + $0x180] ss:$16 sps:$4 sm:$0xff]  }
  0x47   : > { %v1036_v49 = vld [vmem:[%s1271_s6 + $0x184] ss:$16 sps:$4 sm:$0xff]   ;;  %v1038_v50 = vld [vmem:[%s1271_s6 + $0x18c] ss:$16 sps:$4 sm:$0xff]   ;;  %628 = vmatprep.mubr.bf16.mxu0 %v1062_v46  ;;  %671 = vmatprep.mubr.bf16.mxu1 %v1062_v46  ;;  %v1041_v52 = vld [vmem:[%s1271_s6 + $0x188] ss:$16 sps:$4 sm:$0xff]  }
  0x48   : > { %605 = vmatpush1.bf16.msra.mxu0 %v992_v18  ;;  %648 = vmatpush1.bf16.msra.mxu1 %v993_v19  ;;  %v1042_v53 = vld [vmem:[%s1271_s6 + $0x1a4] ss:$16 sps:$4 sm:$0xff]   ;;  %v1044_v54 = vld [vmem:[%s1271_s6 + $0x1ac] ss:$16 sps:$4 sm:$0xff]   ;;  %v1046_v55 = vld [vmem:[%s1271_s6 + $0x1a0] ss:$16 sps:$4 sm:$0xff]  }
  0x49   : > { %606 = vmatprep.subr.bf16.mxu0 %v994_v20  ;;  %649 = vmatprep.subr.bf16.mxu1 %v996_v21  ;;  %v1047_v56 = vld [vmem:[%s1271_s6 + $0x1a8] ss:$16 sps:$4 sm:$0xff]   ;;  %v1048_v57 = vld [vmem:[%s1271_s6 + $0x1c4] ss:$16 sps:$4 sm:$0xff]   ;;  %v1050_v58 = vld [vmem:[%s1271_s6 + $0x1cc] ss:$16 sps:$4 sm:$0xff]  }
  0x4a   : > { %v1052_v59 = vld [vmem:[%s1271_s6 + $0x1c0] ss:$16 sps:$4 sm:$0xff]   ;;  %v1053_v60 = vld [vmem:[%s1271_s6 + $0x1c8] ss:$16 sps:$4 sm:$0xff]   ;;  %v1054_v61 = vld [vmem:[%s1271_s6 + $0x1e4] ss:$16 sps:$4 sm:$0xff]  }
  0x4b   : > { %v1056_v62 = vld [vmem:[%s1271_s6 + $0x1ec] ss:$16 sps:$4 sm:$0xff]   ;;  %v1058_v63 = vld [vmem:[%s1271_s6 + $0x1e0] ss:$16 sps:$4 sm:$0xff]   ;;  %v1059_v0 = vld [vmem:[%s1271_s6 + $0x1e8] ss:$16 sps:$4 sm:$0xff]  }
  0x4c   : > { %607 = vmatpush1.bf16.msra.mxu0 %v998_v22  ;;  %650 = vmatpush1.bf16.msra.mxu1 %v999_v23  ;;  %v1060_v1 = vld [vmem:[%s1390_s0] ss:$8 sps:$4 sm:$0xff]   ;;  %s1348_s7 = scalar_lea.vmem [#allocation4], %s832_s4  ;;  %p1398_p8 = scmp.ne.s32.totalorder %s1395_s22, 0 }
  0x4d   : > { %608 = vmatprep.subr.bf16.mxu0 %v1000_v24  ;;  %651 = vmatprep.subr.bf16.mxu1 %v1002_v25  ;;  %s905_s8 = sshll.u32 (%p1398_p8), %s1135_s12, 5 }
  0x4e   : > { %s702_s17 = scalar_lea.vmem (%p1398_p8), %s1392_s2, %s905_s8 }
  0x50   : > { %609 = vmatpush1.bf16.msra.mxu0 %v1004_v26  ;;  %652 = vmatpush1.bf16.msra.mxu1 %v1005_v27 }
  0x51   : > { %610 = vmatprep.subr.bf16.mxu0 %v1006_v28  ;;  %653 = vmatprep.subr.bf16.mxu1 %v1008_v29 }
  0x54   : > { %611 = vmatpush1.bf16.msra.mxu0 %v1010_v30  ;;  %654 = vmatpush1.bf16.msra.mxu1 %v1011_v31 }
  0x55   : > { %612 = vmatprep.subr.bf16.mxu0 %v1012_v32  ;;  %655 = vmatprep.subr.bf16.mxu1 %v1014_v33 }
  0x58   : > { %613 = vmatpush1.bf16.msra.mxu0 %v1016_v34  ;;  %656 = vmatpush1.bf16.msra.mxu1 %v1017_v35 }
  0x59   : > { %614 = vmatprep.subr.bf16.mxu0 %v1018_v36  ;;  %657 = vmatprep.subr.bf16.mxu1 %v1020_v37 }
  0x5c   : > { %615 = vmatpush1.bf16.msra.mxu0 %v1022_v38  ;;  %658 = vmatpush1.bf16.msra.mxu1 %v1023_v39 }
  0x5d   : > { %616 = vmatprep.subr.bf16.mxu0 %v1024_v40  ;;  %659 = vmatprep.subr.bf16.mxu1 %v1026_v41 }
  0x60   : > { %617 = vmatpush1.bf16.msra.mxu0 %v1028_v42  ;;  %660 = vmatpush1.bf16.msra.mxu1 %v1029_v43 }
  0x61   : > { %618 = vmatprep.subr.bf16.mxu0 %v1030_v44  ;;  %661 = vmatprep.subr.bf16.mxu1 %v1032_v45 }
  0x64   : > { %619 = vmatpush1.bf16.msra.mxu0 %v1034_v47  ;;  %662 = vmatpush1.bf16.msra.mxu1 %v1035_v48 }
  0x65   : > { %620 = vmatprep.subr.bf16.mxu0 %v1036_v49  ;;  %663 = vmatprep.subr.bf16.mxu1 %v1038_v50 }
  0x68   : > { %621 = vmatpush1.bf16.msra.mxu0 %v1040_v51  ;;  %664 = vmatpush1.bf16.msra.mxu1 %v1041_v52 }
  0x69   : > { %622 = vmatprep.subr.bf16.mxu0 %v1042_v53  ;;  %665 = vmatprep.subr.bf16.mxu1 %v1044_v54 }
  0x6c   : > { %623 = vmatpush1.bf16.msra.mxu0 %v1046_v55  ;;  %666 = vmatpush1.bf16.msra.mxu1 %v1047_v56 }
  0x6d   : > { %624 = vmatprep.subr.bf16.mxu0 %v1048_v57  ;;  %667 = vmatprep.subr.bf16.mxu1 %v1050_v58 }
  0x70   : > { %625 = vmatpush1.bf16.msra.mxu0 %v1052_v59  ;;  %668 = vmatpush1.bf16.msra.mxu1 %v1053_v60 }
  0x71   : > { %626 = vmatprep.subr.bf16.mxu0 %v1054_v61  ;;  %669 = vmatprep.subr.bf16.mxu1 %v1056_v62 }
  0x74   : > { %627 = vmatpush1.bf16.msra.mxu0 %v1058_v63  ;;  %670 = vmatpush1.bf16.msra.mxu1 %v1059_v0 }
  0x77   : > { %629 = vmatmul.mubr.bf16.vlgmr.msra.gmra.mrb[0].mxu0 %v1060_v1  ;;  %672 = vmatmul.mubr.bf16.vlgmr.msra.gmra.mrb[0].mxu1 %v1060_v1 }
 0x148   : > { %696 = sbr.rel (!%p1398_p8) target bundleno = 343 (0x157), region = 36 }
 0x14a   : > { %v630_v2 = vpop.f32.mrb[0].mxu0  ;;  %v673_v3 = vpop.f32.mrb[0].mxu1 }
 0x14b   : > { %682 = vst [vmem:[%s1348_s7] sm:$0xff] %v630_v2  ;;  %684 = vst [vmem:[%s1348_s7 + $0x10] sm:$0xff] %v673_v3  ;;  %v632_v4 = vpop.f32.mrb[1].mxu0  ;;  %v675_v5 = vpop.f32.mrb[1].mxu1 }
 0x14c   : > { %683 = vst [vmem:[%s1348_s7 + $0x8] sm:$0xff] %v632_v4  ;;  %685 = vst [vmem:[%s1348_s7 + $0x18] sm:$0xff] %v675_v5  ;;  %v634_v6 = vpop.f32.mrb[2].mxu0  ;;  %v677_v7 = vpop.f32.mrb[2].mxu1 }
 0x14d   : > { %686 = vst [vmem:[%s1348_s7 + $0x20] sm:$0xff] %v634_v6  ;;  %688 = vst [vmem:[%s1348_s7 + $0x30] sm:$0xff] %v677_v7  ;;  %v636_v8 = vpop.f32.mrb[3].mxu0  ;;  %v679_v9 = vpop.f32.mrb[3].mxu1 }
 0x14e   : > { %687 = vst [vmem:[%s1348_s7 + $0x28] sm:$0xff] %v636_v8  ;;  %689 = vst [vmem:[%s1348_s7 + $0x38] sm:$0xff] %v679_v9 }
 0x152   : > { %v715_v10 = vld [vmem:[%s1348_s7] sm:$0xff]  ;;  %v719_v12 = vld [vmem:[%s1348_s7 + $0x10] sm:$0xff] }
 0x153   : > { %v717_v11 = vld [vmem:[%s1348_s7 + $0x8] sm:$0xff]  ;;  %v721_v13 = vld [vmem:[%s1348_s7 + $0x18] sm:$0xff]  ;;  %716 = vst [vmem:[%s702_s17] sm:$0xff] %v715_v10  ;;  %720 = vst [vmem:[%s702_s17 + $0x10] sm:$0xff] %v719_v12 }
 0x154   : > { %v723_v14 = vld [vmem:[%s1348_s7 + $0x20] sm:$0xff]  ;;  %718 = vst [vmem:[%s702_s17 + $0x8] sm:$0xff] %v717_v11  ;;  %722 = vst [vmem:[%s702_s17 + $0x18] sm:$0xff] %v721_v13  ;;  %v727_v16 = vld [vmem:[%s1348_s7 + $0x30] sm:$0xff] }
 0x155   : > { %v725_v15 = vld [vmem:[%s1348_s7 + $0x28] sm:$0xff]  ;;  %724 = vst [vmem:[%s702_s17 + $0xc0] sm:$0xff] %v723_v14  ;;  %v729_v17 = vld [vmem:[%s1348_s7 + $0x38] sm:$0xff]  ;;  %728 = vst [vmem:[%s702_s17 + $0xd0] sm:$0xff] %v727_v16 }
 0x156   : > { %726 = vst [vmem:[%s702_s17 + $0xc8] sm:$0xff] %v725_v15  ;;  %730 = vst [vmem:[%s702_s17 + $0xd8] sm:$0xff] %v729_v17 }
 0x157 PF: > { %s15_s14 = sadd.s32 1, %s1143_s14   ;;  %s1399_s9 = smov %s1127_s10 }
 0x158   : > { %p12_p9 = scmp.ge.s32.totalorder %s15_s14, 8   ;;  %s1400_s10 = smov %s1131_s11 }
 0x159   : > { %s1401_s11 = smov %s1212_s21  ;;  %s1402_s12 = smov %s1139_s13 }
 0x15a   : > { %s1403_s13 = smov %s1405_s16  ;;  %14 = sbr.rel (!%p12_p9) target bundleno = 4 (0x4), region = 94 }
 0x161   :  { %746 = vsyncpa [#allocation3], 1 }
 0x162   :  { %748 = vsyncpa [#allocation3 + $0x1], 1 }

</bundles_post_ra>
